<compile_context>
chip_gen: v5e
topology: v5e:2x2
jax: 0.10.0
libtpu: 0.0.40
codegen_flags: <defaults>
</compile_context>

<pallas_src>
import jax
import jax.numpy as jnp
from jax.experimental import pallas as pl
from jax.experimental.pallas import tpu as pltpu


# ------------------------------------------------------------------
# Pallas kernel: single HBM -> HBM DMA (out = x), no grid, no VMEM staging.
# ------------------------------------------------------------------
def _identity_dma_kernel(x_hbm_ref, o_hbm_ref, sem):
    cp = pltpu.make_async_copy(x_hbm_ref, o_hbm_ref, sem)
    cp.start()
    cp.wait()


def _identity(x: jax.Array) -> jax.Array:
    """Identity over an arbitrary-shaped array as one HBM->HBM DMA."""
    return pl.pallas_call(
        _identity_dma_kernel,
        out_shape=jax.ShapeDtypeStruct(x.shape, x.dtype),
        # Leave both operands in HBM; the kernel body drives the copy itself.
        in_specs=[pl.BlockSpec(memory_space=pl.ANY)],
        out_specs=pl.BlockSpec(memory_space=pl.ANY),
        scratch_shapes=[pltpu.SemaphoreType.DMA],
    )(x)


# ------------------------------------------------------------------
# Module-equivalent wrapper
# ------------------------------------------------------------------
class Identity:
    """JAX/Pallas equivalent of taming's Identity permuter: forward(x) == x."""

    def __init__(self):
        pass

    def __call__(self, x: jax.Array, reverse: bool = False) -> jax.Array:
        # `reverse` is ignored by the reference module; identity either way.
        del reverse
        return _identity(x)


if __name__ == "__main__":
    H = W = 16
    B = 2
    S = H * W  # flattened token sequence length, matching the permuter usage

    key = jax.random.PRNGKey(0)
    # x plays the role of a batch of flattened token-index sequences.
    x = jax.random.randint(key, (B, S), minval=0, maxval=1024, dtype=jnp.int32)

    perm = Identity()

    y_fwd = jax.block_until_ready(perm(x, reverse=False))
    y_bwd = jax.block_until_ready(perm(y_fwd, reverse=True))

    assert y_fwd.shape == (B, S) and y_fwd.dtype == x.dtype
    assert bool(jnp.all(y_fwd == x)), "Identity forward must return x unchanged"
    assert bool(jnp.all(y_bwd == x)), "Identity reverse must also return x unchanged"

    print("KERNEL_OK")
</pallas_src>

<mosaic_0001>
module attributes {stable_mosaic.version = 11 : i64} {
  func.func @_identity_dma_kernel(%arg0: memref<2x256xi32, #tpu.memory_space<any>>, %arg1: memref<2x256xi32, #tpu.memory_space<any>>, %arg2: memref<!tpu.dma_semaphore, #tpu.memory_space<semaphore_mem>>) attributes {dimension_semantics = [], scalar_prefetch = 0 : i64, scratch_operands = 1 : i64, tpu.core_type = #tpu.core_type<tc>} {
    tpu.enqueue_dma source(%arg0 : memref<2x256xi32, #tpu.memory_space<any>>) target(%arg1 : memref<2x256xi32, #tpu.memory_space<any>>) target_semaphore(%arg2 : memref<!tpu.dma_semaphore, #tpu.memory_space<semaphore_mem>>)
    tpu.wait_dma2 semaphore(%arg2 : memref<!tpu.dma_semaphore, #tpu.memory_space<semaphore_mem>>) src(%arg0 : memref<2x256xi32, #tpu.memory_space<any>>) dst(%arg1 : memref<2x256xi32, #tpu.memory_space<any>>)
    return
  }
}

</mosaic_0001>

<bundles_post_ra>
// kernel: tpu_custom_call.1
= control target key start
LH: loop header
LB: loop body
LE: loop exit
PB: predicated region body
PF: predicated region fallthrough
CT: control target
= control target key end

     0   :  { %s33_s12 = smov [#allocation2]   ;;  %s34_s13 = smov [#allocation3]   ;;  %s52_s0 = inlined_call_operand.hbm [shape: s32[2,256], index: 0, kind: input, shape index: {}]   ;;  %s53_s1 = inlined_call_operand.hbm [shape: s32[2,256], index: 1, kind: output, shape index: {}]  }
   0x1   :  { %s10_s8 = sshll.u32 %s52_s0, 4  ;;  %s12_s11 = sshll.u32 %s53_s1, 4  ;;  %s11_s8 = int_to_ptr.hbm [resolvable:$true] %s10_s8  ;;  %s13_s11 = int_to_ptr.hbm [resolvable:$true] %s12_s11 }
   0x2   :  { %s35_s14 = smov 0  }
   0x3   :  { %16 = dma.general %s11_s8, 64, %s13_s11, %s33_s12, %s34_s13, [#allocation4], %s35_s14, 0  }
   0x4   :  { %31 = dma.done.wait [#allocation2], 64 }
   0x5   :  { %32 = vsyncadd [#allocation2], 4294967232 }
   0x6   :  { %21 = vsyncmov [#allocation2] }
   0x9   :  { %s22_s15 = vpop.sfrf %21 }
   0xa   :  { %p27_p0 = scmp.ne.s32.totalorder %s22_s15, 0 }
   0xc   :  { %26 = shalt.err (%p27_p0)  }

</bundles_post_ra>
